<compile_context>
chip_gen: v7x
topology: tpu7x:2x2x1
jax: 0.10.0
libtpu: 0.0.40
codegen_flags: <defaults>
</compile_context>

<pallas_src>
import jax
import jax.numpy as jnp
from jax.experimental import pallas as pl
from jax.experimental.pallas import tpu as pltpu


# ----------------------------- Pallas kernel --------------------------------
def fused_autoencoder_kernel(x_ref, *refs):
    """All four IEBlocks for one batch element.

    x_ref : (1, W, H) input slice, activation layout (W, C)
    refs  : 6 refs per block: w1t (H, F_p), b1 (1, F_p), w2 (W, W),
            b2 (W, 1), w3t (F_p, F), b3 (1, F); last ref is the output
            (1, W, F_last).
    """
    o_ref = refs[-1]
    w_refs = refs[:-1]
    n_blocks = len(w_refs) // 6

    y = x_ref[0]                                      # (W, H)
    for blk in range(n_blocks):                       # static unroll (4 blocks)
        w1t, b1, w2, b2, w3t, b3 = w_refs[6 * blk:6 * blk + 6]
        # mlp1: (W, H) @ (H, F_p) + (1, F_p)  -> (W, F_p)
        y = jnp.dot(y, w1t[...], preferred_element_type=jnp.float32) + b1[...]
        # mlp2 along the W axis: (W, W) @ (W, F_p) + (W, 1) -> (W, F_p)
        y = jnp.dot(w2[...], y, preferred_element_type=jnp.float32) + b2[...]
        # mlp3: (W, F_p) @ (F_p, F) + (1, F) -> (W, F)
        y = jnp.dot(y, w3t[...], preferred_element_type=jnp.float32) + b3[...]

    o_ref[0] = y.astype(o_ref.dtype)


# ------------------------------ JAX wrapper ----------------------------------
def ie_autoencoder(x, params):
    """x: (B, H, W) float32 -> (B, H, W), identical semantics to IEAutoEncoder."""
    B, H, Wd = x.shape

    flat_params = []
    flops = 0
    h_in = H
    for p in params:
        F_p = p["w1"].shape[0]
        F = p["w3"].shape[0]
        assert p["w1"].shape == (F_p, h_in)
        assert p["w2"].shape == (Wd, Wd)
        assert p["w3"].shape == (F, F_p)
        flat_params += [
            p["w1"].T,                  # (H_in, F_p)   mlp1, pre-transposed
            p["b1"].reshape(1, F_p),
            p["w2"],                    # (W, W)        mlp2, used as lhs
            p["b2"].reshape(Wd, 1),
            p["w3"].T,                  # (F_p, F)      mlp3, pre-transposed
            p["b3"].reshape(1, F),
        ]
        flops += 2 * B * (Wd * h_in * F_p + Wd * Wd * F_p + Wd * F_p * F)
        h_in = F
    h_out = h_in                                       # == H for the autoencoder

    # Wrapper-side layout plumbing: largest dim last (lane-dense inside kernel).
    xt = jnp.transpose(x, (0, 2, 1))                   # (B, W, H)

    def const_map(ndim):
        return lambda b: (0,) * ndim                   # weights resident across batch

    param_specs = [pl.BlockSpec(a.shape, const_map(a.ndim)) for a in flat_params]
    bytes_accessed = 4 * (x.size + B * Wd * h_out
                          + sum(int(a.size) for a in flat_params))

    out = pl.pallas_call(
        fused_autoencoder_kernel,
        out_shape=jax.ShapeDtypeStruct((B, Wd, h_out), x.dtype),
        grid=(B,),
        in_specs=[pl.BlockSpec((1, Wd, H), lambda b: (b, 0, 0))] + param_specs,
        out_specs=pl.BlockSpec((1, Wd, h_out), lambda b: (b, 0, 0)),
        compiler_params=pltpu.CompilerParams(
            dimension_semantics=("parallel",)),        # shards batch on v7x's 2 TCs
        cost_estimate=pl.CostEstimate(
            flops=flops, transcendentals=0, bytes_accessed=bytes_accessed),
    )(xt, *flat_params)

    return jnp.transpose(out, (0, 2, 1))               # back to module layout (B, H, W)


# ------------------------- parameter construction ---------------------------
def make_ieblock_params(key, H, W, F_p, F):
    ks = jax.random.split(key, 6)
    scale = 0.1
    return dict(
        w1=scale * jax.random.normal(ks[0], (F_p, H), jnp.float32),
        b1=scale * jax.random.normal(ks[1], (F_p,), jnp.float32),
        w2=scale * jax.random.normal(ks[2], (W, W), jnp.float32),
        b2=scale * jax.random.normal(ks[3], (W,), jnp.float32),
        w3=scale * jax.random.normal(ks[4], (F, F_p), jnp.float32),
        b3=scale * jax.random.normal(ks[5], (F,), jnp.float32),
    )


# ------------------------- pure-JAX reference -------------------------------
def ieblock_ref(x, p):
    b, h, w = x.shape
    y = jnp.transpose(x, (0, 2, 1)).reshape(b * w, h)
    y = y @ p["w1"].T + p["b1"]
    y = y.reshape(b, w, -1)
    y = jnp.transpose(y, (0, 2, 1))
    y = y @ p["w2"].T + p["b2"]
    y = jnp.transpose(y, (0, 2, 1))
    y = y @ p["w3"].T + p["b3"]
    y = jnp.transpose(y, (0, 2, 1))
    return y


def ie_autoencoder_ref(x, params):
    for p in params:
        x = ieblock_ref(x, p)
    return x


# --------------------------------- main --------------------------------------
if __name__ == "__main__":
    # Shapes consistent with IEAutoEncoder(H, W, F_p1, F1, F_p2, F2)
    B, H, W = 2, 16, 8
    F_p1, F1, F_p2, F2 = 32, 24, 16, 12

    key = jax.random.PRNGKey(0)
    kx, k1, k2, k3, k4 = jax.random.split(key, 5)

    x = jax.random.normal(kx, (B, H, W), jnp.float32)

    params = [
        make_ieblock_params(k1, H, W, F_p1, F1),    # encoder1: (B,H,W)->(B,F1,W)
        make_ieblock_params(k2, F1, W, F_p2, F2),   # encoder2: ->(B,F2,W)
        make_ieblock_params(k3, F2, W, F_p2, F1),   # decoder1: ->(B,F1,W)
        make_ieblock_params(k4, F1, W, F_p1, H),    # decoder2: ->(B,H,W)
    ]

    out = jax.block_until_ready(ie_autoencoder(x, params))
    ref = jax.block_until_ready(ie_autoencoder_ref(x, params))

    assert out.shape == (B, H, W), out.shape
    assert jnp.allclose(out, ref, atol=1e-5, rtol=1e-5), "mismatch vs reference"
    print("KERNEL_OK")
</pallas_src>

<mosaic_0001>
module attributes {stable_mosaic.version = 11 : i64} {
  func.func @fused_autoencoder_kernel(%arg0: i32, %arg1: memref<1x8x16xf32, #tpu.memory_space<vmem>>, %arg2: memref<16x32xf32, #tpu.memory_space<vmem>>, %arg3: memref<1x32xf32, #tpu.memory_space<vmem>>, %arg4: memref<8x8xf32, #tpu.memory_space<vmem>>, %arg5: memref<8x1xf32, #tpu.memory_space<vmem>>, %arg6: memref<32x24xf32, #tpu.memory_space<vmem>>, %arg7: memref<1x24xf32, #tpu.memory_space<vmem>>, %arg8: memref<24x16xf32, #tpu.memory_space<vmem>>, %arg9: memref<1x16xf32, #tpu.memory_space<vmem>>, %arg10: memref<8x8xf32, #tpu.memory_space<vmem>>, %arg11: memref<8x1xf32, #tpu.memory_space<vmem>>, %arg12: memref<16x12xf32, #tpu.memory_space<vmem>>, %arg13: memref<1x12xf32, #tpu.memory_space<vmem>>, %arg14: memref<12x16xf32, #tpu.memory_space<vmem>>, %arg15: memref<1x16xf32, #tpu.memory_space<vmem>>, %arg16: memref<8x8xf32, #tpu.memory_space<vmem>>, %arg17: memref<8x1xf32, #tpu.memory_space<vmem>>, %arg18: memref<16x24xf32, #tpu.memory_space<vmem>>, %arg19: memref<1x24xf32, #tpu.memory_space<vmem>>, %arg20: memref<24x32xf32, #tpu.memory_space<vmem>>, %arg21: memref<1x32xf32, #tpu.memory_space<vmem>>, %arg22: memref<8x8xf32, #tpu.memory_space<vmem>>, %arg23: memref<8x1xf32, #tpu.memory_space<vmem>>, %arg24: memref<32x16xf32, #tpu.memory_space<vmem>>, %arg25: memref<1x16xf32, #tpu.memory_space<vmem>>, %arg26: memref<1x8x16xf32, #tpu.memory_space<vmem>>) attributes {dimension_semantics = [#tpu.dimension_semantics<parallel>], iteration_bounds = array<i64: 2>, scalar_prefetch = 0 : i64, scratch_operands = 0 : i64, tpu.core_type = #tpu.core_type<tc>, window_params = [{transform_indices = @transform_0, window_bounds = array<i64: 1, 8, 16>}, {pipeline_mode = #tpu.pipeline_mode<synchronous>, transform_indices = @transform_1, window_bounds = array<i64: 16, 32>}, {pipeline_mode = #tpu.pipeline_mode<synchronous>, transform_indices = @transform_2, window_bounds = array<i64: 1, 32>}, {pipeline_mode = #tpu.pipeline_mode<synchronous>, transform_indices = @transform_3, window_bounds = array<i64: 8, 8>}, {pipeline_mode = #tpu.pipeline_mode<synchronous>, transform_indices = @transform_4, window_bounds = array<i64: 8, 1>}, {pipeline_mode = #tpu.pipeline_mode<synchronous>, transform_indices = @transform_5, window_bounds = array<i64: 32, 24>}, {pipeline_mode = #tpu.pipeline_mode<synchronous>, transform_indices = @transform_6, window_bounds = array<i64: 1, 24>}, {pipeline_mode = #tpu.pipeline_mode<synchronous>, transform_indices = @transform_7, window_bounds = array<i64: 24, 16>}, {pipeline_mode = #tpu.pipeline_mode<synchronous>, transform_indices = @transform_8, window_bounds = array<i64: 1, 16>}, {pipeline_mode = #tpu.pipeline_mode<synchronous>, transform_indices = @transform_9, window_bounds = array<i64: 8, 8>}, {pipeline_mode = #tpu.pipeline_mode<synchronous>, transform_indices = @transform_10, window_bounds = array<i64: 8, 1>}, {pipeline_mode = #tpu.pipeline_mode<synchronous>, transform_indices = @transform_11, window_bounds = array<i64: 16, 12>}, {pipeline_mode = #tpu.pipeline_mode<synchronous>, transform_indices = @transform_12, window_bounds = array<i64: 1, 12>}, {pipeline_mode = #tpu.pipeline_mode<synchronous>, transform_indices = @transform_13, window_bounds = array<i64: 12, 16>}, {pipeline_mode = #tpu.pipeline_mode<synchronous>, transform_indices = @transform_14, window_bounds = array<i64: 1, 16>}, {pipeline_mode = #tpu.pipeline_mode<synchronous>, transform_indices = @transform_15, window_bounds = array<i64: 8, 8>}, {pipeline_mode = #tpu.pipeline_mode<synchronous>, transform_indices = @transform_16, window_bounds = array<i64: 8, 1>}, {pipeline_mode = #tpu.pipeline_mode<synchronous>, transform_indices = @transform_17, window_bounds = array<i64: 16, 24>}, {pipeline_mode = #tpu.pipeline_mode<synchronous>, transform_indices = @transform_18, window_bounds = array<i64: 1, 24>}, {pipeline_mode = #tpu.pipeline_mode<synchronous>, transform_indices = @transform_19, window_bounds = array<i64: 24, 32>}, {pipeline_mode = #tpu.pipeline_mode<synchronous>, transform_indices = @transform_20, window_bounds = array<i64: 1, 32>}, {pipeline_mode = #tpu.pipeline_mode<synchronous>, transform_indices = @transform_21, window_bounds = array<i64: 8, 8>}, {pipeline_mode = #tpu.pipeline_mode<synchronous>, transform_indices = @transform_22, window_bounds = array<i64: 8, 1>}, {pipeline_mode = #tpu.pipeline_mode<synchronous>, transform_indices = @transform_23, window_bounds = array<i64: 32, 16>}, {pipeline_mode = #tpu.pipeline_mode<synchronous>, transform_indices = @transform_24, window_bounds = array<i64: 1, 16>}, {transform_indices = @transform_25, window_bounds = array<i64: 1, 8, 16>}]} {
    %c0 = arith.constant 0 : index
    %c0_0 = arith.constant 0 : index
    %c0_1 = arith.constant 0 : index
    %0 = vector.load %arg1[%c0, %c0_0, %c0_1] : memref<1x8x16xf32, #tpu.memory_space<vmem>>, vector<1x8x16xf32>
    %1 = vector.shape_cast %0 : vector<1x8x16xf32> to vector<8x16xf32>
    %c0_2 = arith.constant 0 : index
    %c0_3 = arith.constant 0 : index
    %2 = vector.load %arg2[%c0_2, %c0_3] : memref<16x32xf32, #tpu.memory_space<vmem>>, vector<16x32xf32>
    %cst = arith.constant dense<0.000000e+00> : vector<8x32xf32>
    %3 = tpu.matmul %1, %2, %cst {dimension_numbers = #tpu.dot_dimension_numbers<[1], [0], [0], [1], [0, 0, 1, 1], [], []>} : vector<8x16xf32>, vector<16x32xf32>, vector<8x32xf32> -> vector<8x32xf32>
    %c0_4 = arith.constant 0 : index
    %c0_5 = arith.constant 0 : index
    %4 = vector.load %arg3[%c0_4, %c0_5] : memref<1x32xf32, #tpu.memory_space<vmem>>, vector<1x32xf32>
    %5 = vector.broadcast %4 : vector<1x32xf32> to vector<8x32xf32>
    %6 = arith.addf %3, %5 : vector<8x32xf32>
    %c0_6 = arith.constant 0 : index
    %c0_7 = arith.constant 0 : index
    %7 = vector.load %arg4[%c0_6, %c0_7] : memref<8x8xf32, #tpu.memory_space<vmem>>, vector<8x8xf32>
    %cst_8 = arith.constant dense<0.000000e+00> : vector<8x32xf32>
    %8 = tpu.matmul %7, %6, %cst_8 {dimension_numbers = #tpu.dot_dimension_numbers<[1], [0], [0], [1], [0, 0, 1, 1], [], []>} : vector<8x8xf32>, vector<8x32xf32>, vector<8x32xf32> -> vector<8x32xf32>
    %c0_9 = arith.constant 0 : index
    %c0_10 = arith.constant 0 : index
    %9 = vector.load %arg5[%c0_9, %c0_10] : memref<8x1xf32, #tpu.memory_space<vmem>>, vector<8x1xf32>
    %10 = vector.broadcast %9 : vector<8x1xf32> to vector<8x32xf32>
    %11 = arith.addf %8, %10 : vector<8x32xf32>
    %c0_11 = arith.constant 0 : index
    %c0_12 = arith.constant 0 : index
    %12 = vector.load %arg6[%c0_11, %c0_12] : memref<32x24xf32, #tpu.memory_space<vmem>>, vector<32x24xf32>
    %cst_13 = arith.constant dense<0.000000e+00> : vector<8x24xf32>
    %13 = tpu.matmul %11, %12, %cst_13 {dimension_numbers = #tpu.dot_dimension_numbers<[1], [0], [0], [1], [0, 0, 1, 1], [], []>} : vector<8x32xf32>, vector<32x24xf32>, vector<8x24xf32> -> vector<8x24xf32>
    %c0_14 = arith.constant 0 : index
    %c0_15 = arith.constant 0 : index
    %14 = vector.load %arg7[%c0_14, %c0_15] : memref<1x24xf32, #tpu.memory_space<vmem>>, vector<1x24xf32>
    %15 = vector.broadcast %14 : vector<1x24xf32> to vector<8x24xf32>
    %16 = arith.addf %13, %15 : vector<8x24xf32>
    %c0_16 = arith.constant 0 : index
    %c0_17 = arith.constant 0 : index
    %17 = vector.load %arg8[%c0_16, %c0_17] : memref<24x16xf32, #tpu.memory_space<vmem>>, vector<24x16xf32>
    %cst_18 = arith.constant dense<0.000000e+00> : vector<8x16xf32>
    %18 = tpu.matmul %16, %17, %cst_18 {dimension_numbers = #tpu.dot_dimension_numbers<[1], [0], [0], [1], [0, 0, 1, 1], [], []>} : vector<8x24xf32>, vector<24x16xf32>, vector<8x16xf32> -> vector<8x16xf32>
    %c0_19 = arith.constant 0 : index
    %c0_20 = arith.constant 0 : index
    %19 = vector.load %arg9[%c0_19, %c0_20] : memref<1x16xf32, #tpu.memory_space<vmem>>, vector<1x16xf32>
    %20 = vector.broadcast %19 : vector<1x16xf32> to vector<8x16xf32>
    %21 = arith.addf %18, %20 : vector<8x16xf32>
    %c0_21 = arith.constant 0 : index
    %c0_22 = arith.constant 0 : index
    %22 = vector.load %arg10[%c0_21, %c0_22] : memref<8x8xf32, #tpu.memory_space<vmem>>, vector<8x8xf32>
    %cst_23 = arith.constant dense<0.000000e+00> : vector<8x16xf32>
    %23 = tpu.matmul %22, %21, %cst_23 {dimension_numbers = #tpu.dot_dimension_numbers<[1], [0], [0], [1], [0, 0, 1, 1], [], []>} : vector<8x8xf32>, vector<8x16xf32>, vector<8x16xf32> -> vector<8x16xf32>
    %c0_24 = arith.constant 0 : index
    %c0_25 = arith.constant 0 : index
    %24 = vector.load %arg11[%c0_24, %c0_25] : memref<8x1xf32, #tpu.memory_space<vmem>>, vector<8x1xf32>
    %25 = vector.broadcast %24 : vector<8x1xf32> to vector<8x16xf32>
    %26 = arith.addf %23, %25 : vector<8x16xf32>
    %c0_26 = arith.constant 0 : index
    %c0_27 = arith.constant 0 : index
    %27 = vector.load %arg12[%c0_26, %c0_27] : memref<16x12xf32, #tpu.memory_space<vmem>>, vector<16x12xf32>
    %cst_28 = arith.constant dense<0.000000e+00> : vector<8x12xf32>
    %28 = tpu.matmul %26, %27, %cst_28 {dimension_numbers = #tpu.dot_dimension_numbers<[1], [0], [0], [1], [0, 0, 1, 1], [], []>} : vector<8x16xf32>, vector<16x12xf32>, vector<8x12xf32> -> vector<8x12xf32>
    %c0_29 = arith.constant 0 : index
    %c0_30 = arith.constant 0 : index
    %29 = vector.load %arg13[%c0_29, %c0_30] : memref<1x12xf32, #tpu.memory_space<vmem>>, vector<1x12xf32>
    %30 = vector.broadcast %29 : vector<1x12xf32> to vector<8x12xf32>
    %31 = arith.addf %28, %30 : vector<8x12xf32>
    %c0_31 = arith.constant 0 : index
    %c0_32 = arith.constant 0 : index
    %32 = vector.load %arg14[%c0_31, %c0_32] : memref<12x16xf32, #tpu.memory_space<vmem>>, vector<12x16xf32>
    %cst_33 = arith.constant dense<0.000000e+00> : vector<8x16xf32>
    %33 = tpu.matmul %31, %32, %cst_33 {dimension_numbers = #tpu.dot_dimension_numbers<[1], [0], [0], [1], [0, 0, 1, 1], [], []>} : vector<8x12xf32>, vector<12x16xf32>, vector<8x16xf32> -> vector<8x16xf32>
    %c0_34 = arith.constant 0 : index
    %c0_35 = arith.constant 0 : index
    %34 = vector.load %arg15[%c0_34, %c0_35] : memref<1x16xf32, #tpu.memory_space<vmem>>, vector<1x16xf32>
    %35 = vector.broadcast %34 : vector<1x16xf32> to vector<8x16xf32>
    %36 = arith.addf %33, %35 : vector<8x16xf32>
    %c0_36 = arith.constant 0 : index
    %c0_37 = arith.constant 0 : index
    %37 = vector.load %arg16[%c0_36, %c0_37] : memref<8x8xf32, #tpu.memory_space<vmem>>, vector<8x8xf32>
    %cst_38 = arith.constant dense<0.000000e+00> : vector<8x16xf32>
    %38 = tpu.matmul %37, %36, %cst_38 {dimension_numbers = #tpu.dot_dimension_numbers<[1], [0], [0], [1], [0, 0, 1, 1], [], []>} : vector<8x8xf32>, vector<8x16xf32>, vector<8x16xf32> -> vector<8x16xf32>
    %c0_39 = arith.constant 0 : index
    %c0_40 = arith.constant 0 : index
    %39 = vector.load %arg17[%c0_39, %c0_40] : memref<8x1xf32, #tpu.memory_space<vmem>>, vector<8x1xf32>
    %40 = vector.broadcast %39 : vector<8x1xf32> to vector<8x16xf32>
    %41 = arith.addf %38, %40 : vector<8x16xf32>
    %c0_41 = arith.constant 0 : index
    %c0_42 = arith.constant 0 : index
    %42 = vector.load %arg18[%c0_41, %c0_42] : memref<16x24xf32, #tpu.memory_space<vmem>>, vector<16x24xf32>
    %cst_43 = arith.constant dense<0.000000e+00> : vector<8x24xf32>
    %43 = tpu.matmul %41, %42, %cst_43 {dimension_numbers = #tpu.dot_dimension_numbers<[1], [0], [0], [1], [0, 0, 1, 1], [], []>} : vector<8x16xf32>, vector<16x24xf32>, vector<8x24xf32> -> vector<8x24xf32>
    %c0_44 = arith.constant 0 : index
    %c0_45 = arith.constant 0 : index
    %44 = vector.load %arg19[%c0_44, %c0_45] : memref<1x24xf32, #tpu.memory_space<vmem>>, vector<1x24xf32>
    %45 = vector.broadcast %44 : vector<1x24xf32> to vector<8x24xf32>
    %46 = arith.addf %43, %45 : vector<8x24xf32>
    %c0_46 = arith.constant 0 : index
    %c0_47 = arith.constant 0 : index
    %47 = vector.load %arg20[%c0_46, %c0_47] : memref<24x32xf32, #tpu.memory_space<vmem>>, vector<24x32xf32>
    %cst_48 = arith.constant dense<0.000000e+00> : vector<8x32xf32>
    %48 = tpu.matmul %46, %47, %cst_48 {dimension_numbers = #tpu.dot_dimension_numbers<[1], [0], [0], [1], [0, 0, 1, 1], [], []>} : vector<8x24xf32>, vector<24x32xf32>, vector<8x32xf32> -> vector<8x32xf32>
    %c0_49 = arith.constant 0 : index
    %c0_50 = arith.constant 0 : index
    %49 = vector.load %arg21[%c0_49, %c0_50] : memref<1x32xf32, #tpu.memory_space<vmem>>, vector<1x32xf32>
    %50 = vector.broadcast %49 : vector<1x32xf32> to vector<8x32xf32>
    %51 = arith.addf %48, %50 : vector<8x32xf32>
    %c0_51 = arith.constant 0 : index
    %c0_52 = arith.constant 0 : index
    %52 = vector.load %arg22[%c0_51, %c0_52] : memref<8x8xf32, #tpu.memory_space<vmem>>, vector<8x8xf32>
    %cst_53 = arith.constant dense<0.000000e+00> : vector<8x32xf32>
    %53 = tpu.matmul %52, %51, %cst_53 {dimension_numbers = #tpu.dot_dimension_numbers<[1], [0], [0], [1], [0, 0, 1, 1], [], []>} : vector<8x8xf32>, vector<8x32xf32>, vector<8x32xf32> -> vector<8x32xf32>
    %c0_54 = arith.constant 0 : index
    %c0_55 = arith.constant 0 : index
    %54 = vector.load %arg23[%c0_54, %c0_55] : memref<8x1xf32, #tpu.memory_space<vmem>>, vector<8x1xf32>
    %55 = vector.broadcast %54 : vector<8x1xf32> to vector<8x32xf32>
    %56 = arith.addf %53, %55 : vector<8x32xf32>
    %c0_56 = arith.constant 0 : index
    %c0_57 = arith.constant 0 : index
    %57 = vector.load %arg24[%c0_56, %c0_57] : memref<32x16xf32, #tpu.memory_space<vmem>>, vector<32x16xf32>
    %cst_58 = arith.constant dense<0.000000e+00> : vector<8x16xf32>
    %58 = tpu.matmul %56, %57, %cst_58 {dimension_numbers = #tpu.dot_dimension_numbers<[1], [0], [0], [1], [0, 0, 1, 1], [], []>} : vector<8x32xf32>, vector<32x16xf32>, vector<8x16xf32> -> vector<8x16xf32>
    %c0_59 = arith.constant 0 : index
    %c0_60 = arith.constant 0 : index
    %59 = vector.load %arg25[%c0_59, %c0_60] : memref<1x16xf32, #tpu.memory_space<vmem>>, vector<1x16xf32>
    %60 = vector.broadcast %59 : vector<1x16xf32> to vector<8x16xf32>
    %61 = arith.addf %58, %60 : vector<8x16xf32>
    %c0_61 = arith.constant 0 : index
    %c0_62 = arith.constant 0 : index
    %c0_63 = arith.constant 0 : index
    %62 = vector.load %arg26[%c0_61, %c0_62, %c0_63] : memref<1x8x16xf32, #tpu.memory_space<vmem>>, vector<1x8x16xf32>
    %63 = vector.shape_cast %62 : vector<1x8x16xf32> to vector<8x16xf32>
    %64 = vector.shape_cast %61 : vector<8x16xf32> to vector<1x8x16xf32>
    tpu.vector_store %arg26[%c0_61, %c0_62, %c0_63], %64 {strides = array<i32>} : memref<1x8x16xf32, #tpu.memory_space<vmem>>, vector<1x8x16xf32>,
    return
  }
  func.func @transform_0(%arg0: i32) -> (i32, i32, i32) {
    %c0_i32 = arith.constant 0 : i32
    %c0_i32_0 = arith.constant 0 : i32
    %c0_i32_1 = arith.constant 0 : i32
    return %arg0, %c0_i32, %c0_i32_0 : i32, i32, i32
  }
  func.func @transform_1(%arg0: i32) -> (i32, i32) {
    %c0_i32 = arith.constant 0 : i32
    %c0_i32_0 = arith.constant 0 : i32
    %c0_i32_1 = arith.constant 0 : i32
    return %c0_i32, %c0_i32_0 : i32, i32
  }
  func.func @transform_2(%arg0: i32) -> (i32, i32) {
    %c0_i32 = arith.constant 0 : i32
    %c0_i32_0 = arith.constant 0 : i32
    %c0_i32_1 = arith.constant 0 : i32
    return %c0_i32, %c0_i32_0 : i32, i32
  }
  func.func @transform_3(%arg0: i32) -> (i32, i32) {
    %c0_i32 = arith.constant 0 : i32
    %c0_i32_0 = arith.constant 0 : i32
    %c0_i32_1 = arith.constant 0 : i32
    return %c0_i32, %c0_i32_0 : i32, i32
  }
  func.func @transform_4(%arg0: i32) -> (i32, i32) {
    %c0_i32 = arith.constant 0 : i32
    %c0_i32_0 = arith.constant 0 : i32
    %c0_i32_1 = arith.constant 0 : i32
    return %c0_i32, %c0_i32_0 : i32, i32
  }
  func.func @transform_5(%arg0: i32) -> (i32, i32) {
    %c0_i32 = arith.constant 0 : i32
    %c0_i32_0 = arith.constant 0 : i32
    %c0_i32_1 = arith.constant 0 : i32
    return %c0_i32, %c0_i32_0 : i32, i32
  }
  func.func @transform_6(%arg0: i32) -> (i32, i32) {
    %c0_i32 = arith.constant 0 : i32
    %c0_i32_0 = arith.constant 0 : i32
    %c0_i32_1 = arith.constant 0 : i32
    return %c0_i32, %c0_i32_0 : i32, i32
  }
  func.func @transform_7(%arg0: i32) -> (i32, i32) {
    %c0_i32 = arith.constant 0 : i32
    %c0_i32_0 = arith.constant 0 : i32
    %c0_i32_1 = arith.constant 0 : i32
    return %c0_i32, %c0_i32_0 : i32, i32
  }
  func.func @transform_8(%arg0: i32) -> (i32, i32) {
    %c0_i32 = arith.constant 0 : i32
    %c0_i32_0 = arith.constant 0 : i32
    %c0_i32_1 = arith.constant 0 : i32
    return %c0_i32, %c0_i32_0 : i32, i32
  }
  func.func @transform_9(%arg0: i32) -> (i32, i32) {
    %c0_i32 = arith.constant 0 : i32
    %c0_i32_0 = arith.constant 0 : i32
    %c0_i32_1 = arith.constant 0 : i32
    return %c0_i32, %c0_i32_0 : i32, i32
  }
  func.func @transform_10(%arg0: i32) -> (i32, i32) {
    %c0_i32 = arith.constant 0 : i32
    %c0_i32_0 = arith.constant 0 : i32
    %c0_i32_1 = arith.constant 0 : i32
    return %c0_i32, %c0_i32_0 : i32, i32
  }
  func.func @transform_11(%arg0: i32) -> (i32, i32) {
    %c0_i32 = arith.constant 0 : i32
    %c0_i32_0 = arith.constant 0 : i32
    %c0_i32_1 = arith.constant 0 : i32
    return %c0_i32, %c0_i32_0 : i32, i32
  }
  func.func @transform_12(%arg0: i32) -> (i32, i32) {
    %c0_i32 = arith.constant 0 : i32
    %c0_i32_0 = arith.constant 0 : i32
    %c0_i32_1 = arith.constant 0 : i32
    return %c0_i32, %c0_i32_0 : i32, i32
  }
  func.func @transform_13(%arg0: i32) -> (i32, i32) {
    %c0_i32 = arith.constant 0 : i32
    %c0_i32_0 = arith.constant 0 : i32
    %c0_i32_1 = arith.constant 0 : i32
    return %c0_i32, %c0_i32_0 : i32, i32
  }
  func.func @transform_14(%arg0: i32) -> (i32, i32) {
    %c0_i32 = arith.constant 0 : i32
    %c0_i32_0 = arith.constant 0 : i32
    %c0_i32_1 = arith.constant 0 : i32
    return %c0_i32, %c0_i32_0 : i32, i32
  }
  func.func @transform_15(%arg0: i32) -> (i32, i32) {
    %c0_i32 = arith.constant 0 : i32
    %c0_i32_0 = arith.constant 0 : i32
    %c0_i32_1 = arith.constant 0 : i32
    return %c0_i32, %c0_i32_0 : i32, i32
  }
  func.func @transform_16(%arg0: i32) -> (i32, i32) {
    %c0_i32 = arith.constant 0 : i32
    %c0_i32_0 = arith.constant 0 : i32
    %c0_i32_1 = arith.constant 0 : i32
    return %c0_i32, %c0_i32_0 : i32, i32
  }
  func.func @transform_17(%arg0: i32) -> (i32, i32) {
    %c0_i32 = arith.constant 0 : i32
    %c0_i32_0 = arith.constant 0 : i32
    %c0_i32_1 = arith.constant 0 : i32
    return %c0_i32, %c0_i32_0 : i32, i32
  }
  func.func @transform_18(%arg0: i32) -> (i32, i32) {
    %c0_i32 = arith.constant 0 : i32
    %c0_i32_0 = arith.constant 0 : i32
    %c0_i32_1 = arith.constant 0 : i32
    return %c0_i32, %c0_i32_0 : i32, i32
  }
  func.func @transform_19(%arg0: i32) -> (i32, i32) {
    %c0_i32 = arith.constant 0 : i32
    %c0_i32_0 = arith.constant 0 : i32
    %c0_i32_1 = arith.constant 0 : i32
    return %c0_i32, %c0_i32_0 : i32, i32
  }
  func.func @transform_20(%arg0: i32) -> (i32, i32) {
    %c0_i32 = arith.constant 0 : i32
    %c0_i32_0 = arith.constant 0 : i32
    %c0_i32_1 = arith.constant 0 : i32
    return %c0_i32, %c0_i32_0 : i32, i32
  }
  func.func @transform_21(%arg0: i32) -> (i32, i32) {
    %c0_i32 = arith.constant 0 : i32
    %c0_i32_0 = arith.constant 0 : i32
    %c0_i32_1 = arith.constant 0 : i32
    return %c0_i32, %c0_i32_0 : i32, i32
  }
  func.func @transform_22(%arg0: i32) -> (i32, i32) {
    %c0_i32 = arith.constant 0 : i32
    %c0_i32_0 = arith.constant 0 : i32
    %c0_i32_1 = arith.constant 0 : i32
    return %c0_i32, %c0_i32_0 : i32, i32
  }
  func.func @transform_23(%arg0: i32) -> (i32, i32) {
    %c0_i32 = arith.constant 0 : i32
    %c0_i32_0 = arith.constant 0 : i32
    %c0_i32_1 = arith.constant 0 : i32
    return %c0_i32, %c0_i32_0 : i32, i32
  }
  func.func @transform_24(%arg0: i32) -> (i32, i32) {
    %c0_i32 = arith.constant 0 : i32
    %c0_i32_0 = arith.constant 0 : i32
    %c0_i32_1 = arith.constant 0 : i32
    return %c0_i32, %c0_i32_0 : i32, i32
  }
  func.func @transform_25(%arg0: i32) -> (i32, i32, i32) {
    %c0_i32 = arith.constant 0 : i32
    %c0_i32_0 = arith.constant 0 : i32
    %c0_i32_1 = arith.constant 0 : i32
    return %arg0, %c0_i32, %c0_i32_0 : i32, i32, i32
  }
}

</mosaic_0001>

<bundles_post_ra>
// kernel: tpu_custom_call.1
= control target key start
LH: loop header
LB: loop body
LE: loop exit
PB: predicated region body
PF: predicated region fallthrough
CT: control target
= control target key end

     0   :  { %s2526_s0 = inlined_call_operand.vmem [shape: f32[2,8,16], index: 0, kind: input, shape index: {}]   ;;  %s2527_s1 = inlined_call_operand.vmem [shape: f32[16,32], index: 1, kind: input, shape index: {}]   ;;  %s2528_s2 = inlined_call_operand.vmem [shape: f32[1,32], index: 2, kind: input, shape index: {}]   ;;  %s2529_s3 = inlined_call_operand.vmem [shape: f32[8,8], index: 3, kind: input, shape index: {}]   ;;  %s2530_s4 = inlined_call_operand.vmem [shape: f32[8,1], index: 4, kind: input, shape index: {}]   ;;  %s2531_s5 = inlined_call_operand.vmem [shape: f32[32,24], index: 5, kind: input, shape index: {}]   ;;  %s2532_s6 = inlined_call_operand.vmem [shape: f32[1,24], index: 6, kind: input, shape index: {}]   ;;  %s2533_s7 = inlined_call_operand.vmem [shape: f32[24,16], index: 7, kind: input, shape index: {}]   ;;  %s2534_s8 = inlined_call_operand.vmem [shape: f32[1,16], index: 8, kind: input, shape index: {}]   ;;  %s2535_s9 = inlined_call_operand.vmem [shape: f32[8,8], index: 9, kind: input, shape index: {}]   ;;  %s2536_s10 = inlined_call_operand.vmem [shape: f32[8,1], index: 10, kind: input, shape index: {}]   ;;  %s2537_s11 = inlined_call_operand.vmem [shape: f32[16,12], index: 11, kind: input, shape index: {}]   ;;  %s2538_s12 = inlined_call_operand.vmem [shape: f32[1,12], index: 12, kind: input, shape index: {}]   ;;  %s2539_s13 = inlined_call_operand.vmem [shape: f32[12,16], index: 13, kind: input, shape index: {}]   ;;  %s2540_s14 = inlined_call_operand.vmem [shape: f32[1,16], index: 14, kind: input, shape index: {}]   ;;  %s2541_s15 = inlined_call_operand.vmem [shape: f32[8,8], index: 15, kind: input, shape index: {}]   ;;  %s2542_s16 = inlined_call_operand.vmem [shape: f32[8,1], index: 16, kind: input, shape index: {}]   ;;  %s2543_s17 = inlined_call_operand.vmem [shape: f32[16,24], index: 17, kind: input, shape index: {}]   ;;  %s2544_s18 = inlined_call_operand.vmem [shape: f32[1,24], index: 18, kind: input, shape index: {}]   ;;  %s2545_s19 = inlined_call_operand.vmem [shape: f32[24,32], index: 19, kind: input, shape index: {}]   ;;  %s2546_s20 = inlined_call_operand.vmem [shape: f32[1,32], index: 20, kind: input, shape index: {}]   ;;  %s2547_s21 = inlined_call_operand.vmem [shape: f32[8,8], index: 21, kind: input, shape index: {}]   ;;  %s2548_s22 = inlined_call_operand.vmem [shape: f32[8,1], index: 22, kind: input, shape index: {}]   ;;  %s2549_s23 = inlined_call_operand.vmem [shape: f32[32,16], index: 23, kind: input, shape index: {}]   ;;  %s2550_s24 = inlined_call_operand.vmem [shape: f32[1,16], index: 24, kind: input, shape index: {}]   ;;  %s2551_s25 = inlined_call_operand.hbm [shape: f32[2,8,16], index: 25, kind: output, shape index: {}]  }
   0x1   :  { %2564 = sst [smem:[#allocation11_spill]] %s2526_s0 }
   0x2   :  { %2565 = sst [smem:[#allocation12_spill]] %s2527_s1 }
   0x3   :  { %2566 = sst [smem:[#allocation13_spill]] %s2528_s2 }
   0x4   :  { %2567 = sst [smem:[#allocation14_spill]] %s2529_s3 }
   0x5   :  { %2568 = sst [smem:[#allocation15_spill]] %s2530_s4 }
   0x6   :  { %2569 = sst [smem:[#allocation16_spill]] %s2531_s5 }
   0x7   :  { %2570 = sst [smem:[#allocation17_spill]] %s2532_s6 }
   0x8   :  { %2571 = sst [smem:[#allocation18_spill]] %s2533_s7 }
   0x9   :  { %2572 = sst [smem:[#allocation19_spill]] %s2534_s8 }
   0xa   :  { %2573 = sst [smem:[#allocation20_spill]] %s2535_s9 }
   0xb   :  { %2574 = sst [smem:[#allocation21_spill]] %s2550_s24 }
   0xc   :  { %2575 = sst [smem:[#allocation22_spill]] %s2551_s25 }
   0xd   :  { %30 = vsyncpa [#allocation3], 0 }
   0xe   :  { %32 = vsyncpa [#allocation3 + $0x1], 0  ;;  %s2260_s29 = smov 0   ;;  %s2262_s2 = smov 0  }
   0xf   :  { %s2264_s6 = smov 0   ;;  %s2266_s30 = smov 0  }
  0x10 LB: > { %2576 = sst [smem:[#allocation5_spill]] %s2110_s29  ;;  %s2281_s7 = sadd.s32 4294967295, %s2122_s30   ;;  %s2122_s30 = sphi %s2266_s30, %s2601_s30   ;;  %s2118_s6 = sphi %s2264_s6, %s2603_s6   ;;  %s2114_s2 = sphi %s2262_s2, %s2605_s2   ;;  %s2110_s29 = sphi %s2260_s29, %s2604_s29  }
  0x11   : > { %2577 = sst [smem:[#allocation6_spill]] %s2118_s6  ;;  %s1826_s3 = sadd.s32 4294967294, %s2122_s30  }
  0x12   : > { %2578 = sst [smem:[#allocation7_spill]] %s2122_s30  ;;  %s2285_s26 = sadd.s32 1, %s2122_s30  }
  0x13   : > { %2579 = sst [smem:[#allocation8_spill]] %s2285_s26  ;;  %s575_s1 = sadd.s32 1, %s2118_s6 }
  0x14   : > { %s572_s8 = ssub.s32 %s2122_s30, %s2285_s26  ;;  %p585_p0 = scmp.ne.s32.totalorder %s2118_s6, %s2114_s2 }
  0x15   : > { %p573_p1 = scmp.eq.s32.totalorder %s572_s8, 0  ;;  %p586_p2 = scmp.eq.s32.totalorder %s2281_s7, 1 }
  0x16   : > { %p591_p3 = scmp.ne.s32.totalorder %s2114_s2, %s2110_s29  ;;  %p592_p4 = scmp.eq.s32.totalorder %s1826_s3, 1 }
  0x17   : > { %s2296_s27 = scalar_select %p573_p1, %s2118_s6, %s575_s1  }
  0x18   : > { %p2298_p5 = por %p586_p2, %p585_p0  ;;  %p2302_p6 = por %p592_p4, %p591_p3 }
  0x19   : > { %2580 = sst [smem:[#allocation9_spill]] %s2296_s27  ;;  %p1829_p7 = scmp.ge.s32.totalorder %s2122_s30, 1 }
  0x1a   : > { %s2582_s28 = scalar_select %p2302_p6, 1, 0 }
  0x1b   : > { %p689_p8 = scmp.lt.s32.totalorder %s2122_s30, 3 }
  0x1c   : > { %2583 = sst [smem:[#allocation10_spill]] %s2582_s28 }
  0x1d   : > { %p690_p9 = pnand %p1829_p7, %p689_p8 }
  0x1e   : > { %s2584_s0 = sld [smem:[#allocation12_spill]] (!%p690_p9)  ;;  %p756_p10 = scmp.lt.s32.totalorder (!%p690_p9), %s2281_s7, 1  ;;  %v2124_v2 = vmov (!%p690_p9), 0.0|0.0   ;;  %vm2125_vm0 = vmmov (!%p690_p9), 0   ;;  %v2126_v4 = vmov (!%p690_p9), 0.0   ;;  %vm770_vm1 = vcmask (!%p690_p9), 130048  }
  0x1f   : > { %693 = sbr.rel (%p690_p9) target bundleno = 2629 (0xa45), region = 120  ;;  %1983 = vmatprep.subr.bf16.mxu0 (!%p690_p9), %v2124_v2  ;;  %1899 = vmatprep.mubr.msk.f32.mxu0 (!%p690_p9), %vm2125_vm0, %v2126_v4  ;;  %s2585_s1 = sld [smem:[#allocation11_spill]] (!%p690_p9)  ;;  %v2127_v7 = vmov (!%p690_p9), 0   ;;  %v1095_v11 = vld [vmem:[%s2536_s10] sm:$0xff] (!%p690_p9)  ;;  %vm851_vm2 = vcmask (!%p690_p9), 64512   ;;  %vm936_vm3 = vcmask (!%p690_p9), 261120  }
  0x20   : > { %1986 = vmatprep.subr.bf16.mxu1 (!%p690_p9), %v2124_v2  ;;  %1915 = vmatprep.mubr.msk.f32.mxu1 (!%p690_p9), %vm2125_vm0, %v2126_v4  ;;  %s2586_s26 = sld [smem:[#allocation15_spill]] (!%p690_p9)  ;;  %s2587_s29 = sld [smem:[#allocation16_spill]] (!%p690_p9)  ;;  %vm1020_vm4 = vcmask (!%p690_p9), 195584   ;;  %v1174_v37 = vld [vmem:[%s2537_s11] sm:$0xff] (!%p690_p9)  ;;  %v1175_v38 = vld [vmem:[%s2537_s11 + $0x8] sm:$0xff] (!%p690_p9)  ;;  %vm1269_vm5 = vcmask (!%p690_p9), 1043456  }
  0x21   : > { %2058 = vset.pattern.permute.xlu0 (!%p690_p9), %v2127_v7  ;;  %2059 = vset.pattern.permute.xlu1 (!%p690_p9), %v2127_v7  ;;  %s2589_s27 = sld [smem:[#allocation13_spill]] (!%p690_p9)  ;;  %s2590_s30 = sld [smem:[#allocation14_spill]] (!%p690_p9)  ;;  %v1996_v39 = vpack.c.bf16 (!%p690_p9), %v1175_v38, %v1174_v37  ;;  %v1256_v44 = vld [vmem:[%s2539_s13] sm:$0xff] (!%p690_p9)  ;;  %v1257_v45 = vld [vmem:[%s2539_s13 + $0x8] sm:$0xf] (!%p690_p9)  ;;  %vm2128_vm6 = vmmov (!%p690_p9), 1  }
  0x22   : > { %s2592_s28 = sld [smem:[#allocation17_spill]] (!%p690_p9)  ;;  %s2594_s6 = sld [smem:[#allocation20_spill]] (!%p690_p9)  ;;  %v1999_v46 = vpack.c.bf16 (!%p690_p9), %v1257_v45, %v1256_v44  ;;  %vm2000_vm7 = vmpackc.low (!%p690_p9), %vm1269_vm5, %vm2128_vm6  ;;  %v1840_v47 = vld [vmem:[%s2538_s12] ss:$0 sm:$0xff] (!%p690_p9)  ;;  %vm1265_vm8 = vcmask (!%p690_p9), 97280   ;;  %v1424_v59 = vld [vmem:[%s2543_s17 + $0x8] sm:$0xff] (!%p690_p9) }
  0x23   : > { %v1344_v51 = vld [vmem:[%s2542_s16] sm:$0xff] (!%p690_p9)  ;;  %v1506_v62 = vld [vmem:[%s2545_s19 + $0x8] sm:$0xff] (!%p690_p9)  ;;  %s753_s5 = sand.u32 (!%p690_p9), 1, %s2114_s2  }
  0x24   : > { %v761_v0 = vld [vmem:[%s2584_s0] sm:$0xff] (!%p690_p9)  ;;  %v762_v1 = vld [vmem:[%s2584_s0 + $0x8] sm:$0xff] (!%p690_p9)  ;;  %1347 = vperm.xlu1 (!%p690_p9), %2059, %v1344_v51   ;;  %s1830_s3 = sshll.u32 (!%p690_p9), %s753_s5, 3 }
  0x25   : > { %v1984_v3 = vpack.c.bf16 (!%p690_p9), %v762_v1, %v761_v0  ;;  %v1589_v52 = vld [vmem:[%s2548_s22] sm:$0xff] (!%p690_p9) }
  0x26   : > { %s757_s8 = scalar_select %p756_p10, %s2281_s7, 1  ;;  %v845_v6 = vld [vmem:[%s2586_s26] sm:$0xff] }
  0x27   : > { %1985 = vmatpush3.bf16.msra.mxu0 %v1984_v3  ;;  %s2588_s25 = smov %s2587_s29  ;;  %v925_v8 = vld [vmem:[%s2587_s29] sm:$0xff]  ;;  %848 = vperm.xlu0 %2058, %v845_v6   ;;  %v1507_v6 = vld [vmem:[%s2545_s19 + $0x10] sm:$0xff]  ;;  %s755_s26 = scalar_lea.vmem [#allocation2], %s1830_s3 }
  0x28   : > { %s1831_s9 = sshll.u32 %s757_s8, 3  ;;  %1902 = vmatprep.subr.mxu0 %v2126_v4  ;;  %v926_v9 = vld [vmem:[%s2588_s25 + $0x8] sm:$0xff]  ;;  %v1832_v12 = vld [vmem:[%s2589_s27] ss:$0 sm:$0xff]  ;;  %v927_v17 = vld [vmem:[%s2588_s25 + $0x10] sm:$0xff]  ;;  %1592 = vperm.xlu1 %2059, %v1589_v52   ;;  %s1767_s27 = sshll.u32 %s755_s26, 4  ;;  %s2485_s27 = int_to_ptr.vmem [resolvable:$true] %s1767_s27 }
  0x29   : > { %s759_s0 = scalar_lea.vmem %s2585_s1, %s1831_s9  ;;  %v1987_v10 = vpack.c.bf16 %v926_v9, %v925_v8  ;;  %v844_v16 = vld [vmem:[%s2590_s30] sm:$0xff]  ;;  %v928_v18 = vld [vmem:[%s2588_s25 + $0x18] sm:$0xff]  ;;  %s2591_s9 = sld [smem:[#allocation18_spill]] }
  0x2a   : > { %v760_v5 = vld [vmem:[%s759_s0] sm:$0xff]  ;;  %v1990_v19 = vpack.c.bf16 %v928_v18, %v927_v17  ;;  %s2593_s1 = sld [smem:[#allocation19_spill]]  ;;  %v1671_v18 = vld [vmem:[%s2549_s23 + $0x18] sm:$0xff]  ;;  %s2595_s0 = sld [smem:[#allocation21_spill]] }
  0x2b   : > { %1900 = vmatmul.mubr.msk.f32.vlgmr.msra.gmra.mrb[0].mxu0 %vm770_vm1, %v760_v5  ;;  %1988 = vmatpush3.bf16.msra.mxu1 %v1987_v10  ;;  %v1835_v28 = vld [vmem:[%s2592_s28] ss:$0 sm:$0xff]  ;;  %s2596_s30 = sld [smem:[#allocation22_spill]]  ;;  %s2060_s8 = scalar_lea.vmem %s2485_s27, 128 }
  0x2c   : > { %1904 = vmatprep.mubr.msk.f32.mxu0 %vm2125_vm0, %v2126_v4  ;;  %1989 = vmatprep.subr.bf16.mxu1 %v2124_v2  ;;  %v1094_v36 = vld [vmem:[%s2594_s6] sm:$0xff]  ;;  %s1854_s6 = sshll.u32 %s2281_s7, 7  ;;  %p2061_p11 = scmp.ne.s32.totalorder %s2485_s27, %s2060_s8 }
  0x2d   : > { %1098 = vperm.xlu0 %2058, %v1095_v11   ;;  %v1842_v53 = vld [vmem:[%s2540_s14] ss:$0 sm:$0xff]  ;;  %s2129_s7 = smov [#allocation2]  }
  0x2e   : > { %v1343_v57 = vld [vmem:[%s2541_s15] sm:$0xff]  ;;  %p2062_p12 = pnand %p2061_p11, %p2298_p5  ;;  %s2064_s3 = sshll.u32 %s2129_s7, 4  ;;  %s2065_s3 = int_to_ptr.vmem [resolvable:$false] %s2064_s3 }
  0x2f   : > { %1991 = vmatpush3.bf16.msra.mxu1 %v1990_v19  ;;  %v1010_v20 = vld [vmem:[%s2591_s9] sm:$0xff]  ;;  %v1011_v21 = vld [vmem:[%s2591_s9 + $0x8] sm:$0xff]  ;;  %v1012_v27 = vld [vmem:[%s2591_s9 + $0x10] sm:$0xff]  ;;  %p2067_p0 = scmp.lt.s32.totalorder %s2485_s27, %s2065_s3 }
  0x30   : > { %1995 = vmatprep.subr.bf16.mxu1 %v2124_v2  ;;  %v1993_v22 = vpack.c.bf16 %v1011_v21, %v1010_v20  ;;  %v1837_v32 = vld [vmem:[%s2593_s1] ss:$0 sm:$0xff]  ;;  %s1754_s1 = scalar_lea.sflag [#allocation3], %s753_s5  ;;  %p2063_p13 = pneg %p2062_p12 }
  0x31   : > { %v1423_v58 = vld [vmem:[%s2543_s17] sm:$0xff]  ;;  %s2597_s28 = smov %s2596_s30  ;;  %s2483_s9 = scalar_lea.hbm %s2596_s30, %s1854_s6 }
  0x32   : > { %v2003_v60 = vpack.c.bf16 %v1424_v59, %v1423_v58  ;;  %v1505_v61 = vld [vmem:[%s2545_s19] sm:$0xff] }
  0x33   : > { %v2006_v63 = vpack.c.bf16 %v1506_v62, %v1505_v61  ;;  %v1846_v7 = vld [vmem:[%s2544_s18] ss:$0 sm:$0xff] }
  0x34   : > { %v1668_v11 = vld [vmem:[%s2549_s23] sm:$0xff] }
  0x35   : > { %v1588_v17 = vld [vmem:[%s2547_s21] sm:$0xff] }
  0xa3   : > { %v1348_v0 = vpop.permute.xlu1 %1347 }
  0xa6   : > { %v849_v23 = vpop.permute.xlu0 %848 }
  0xa7   : > { %v1593_v20 = vpop.permute.xlu1 %1592 }
  0xac   : > { %v1099_v40 = vpop.permute.xlu0 %1098 }
  0xfe   : > { %v840_v13 = vpop.f32.mrb[0].mxu0 }
  0xff   : > { %v841_v14 = vadd.f32 %v1832_v12, %v840_v13  ;;  %v1901_v15 = vpop.f32.mrb[1].mxu0  ;;  %v1669_v12 = vld [vmem:[%s2549_s23 + $0x8] sm:$0xff] }
 0x100   : > { %v2009_v13 = vpack.c.bf16 %v1669_v12, %v1668_v11 }
 0x101   : > { %1903 = vmatpush3.msra.mxu0 %v841_v14  ;;  %v1848_v14 = vld [vmem:[%s2546_s20] ss:$0 sm:$0xff] }
 0x102   : > { %1905 = vmatmul.mubr.msk.f32.vlgmr.msra.gmra.mrb[2].mxu0 %vm851_vm2, %v844_v16  ;;  %1992 = vmatprep.subr.bf16.mxu0 %v2124_v2 }
 0x103   : > { %1924 = vmatprep.mubr.msk.f32.mxu0 %vm2125_vm0, %v2126_v4  ;;  %1994 = vmatpush3.bf16.msra.mxu0 %v1993_v22 }
 0x104   : > { %1922 = vmatprep.subr.mxu0 %v2126_v4 }
 0x107   : > { %1923 = vmatpush3.msra.mxu0 %v1012_v27 }
 0x108   : > { %1927 = vmatprep.subr.mxu0 %v2126_v4 }
 0x1d5   : > { %v921_v24 = vpop.f32.mrb[2].mxu0 }
 0x1d6   : > { %v922_v25 = vadd.f32 %v921_v24, %v849_v23  ;;  %v1906_v26 = vpop.f32.mrb[3].mxu0  ;;  %v1851_v24 = vld [vmem:[%s2595_s0] ss:$0 sm:$0xff]  ;;  %s2066_s0 = scalar_lea.vmem %s2065_s3, 256 }
 0x1d7   : > { %p2068_p1 = scmp.lt.s32.totalorder %s2066_s0, %s2060_s8 }
 0x1d8   : > { %1916 = vmatmul.mubr.msk.f32.vlgmr.msra.gmra.mrb[0].mxu1 %vm936_vm3, %v922_v25 }
 0x1d9   : > { %1936 = vmatprep.mubr.msk.f32.mxu1 %vm2125_vm0, %v2126_v4  ;;  %1997 = vmatpush3.bf16.msra.mxu1 %v1996_v39  ;;  %p2069_p2 = por %p2068_p1, %p2067_p0 }
 0x1da   : > { %1946 = vmatprep.subr.mxu1 %v2126_v4 }
 0x1db   : > { %p2070_p3 = pnand %p2069_p2, %p2063_p13 }
 0x2ab   : > { %v1006_v29 = vpop.f32.mrb[0].mxu1 }
 0x2ac   : > { %v1007_v30 = vadd.f32 %v1835_v28, %v1006_v29  ;;  %v1917_v31 = vpop.f32.mrb[1].mxu1 }
 0x2ae   : > { %1925 = vmatmul.mubr.msk.f32.vlgmr.msra.gmra.mrb[4].mxu0 %vm1020_vm4, %v1007_v30 }
 0x2af   : > { %1929 = vmatprep.mubr.msk.f32.mxu0 %vm2125_vm0, %v2126_v4 }
 0x381   : > { %v1090_v33 = vpop.f32.mrb[4].mxu0 }
 0x382   : > { %v1091_v34 = vadd.f32 %v1837_v32, %v1090_v33  ;;  %v1926_v35 = vpop.f32.mrb[5].mxu0 }
 0x384   : > { %1928 = vmatpush3.msra.mxu0 %v1091_v34 }
 0x385   : > { %1930 = vmatmul.mubr.msk.f32.vlgmr.msra.gmra.mrb[6].mxu0 %vm851_vm2, %v1094_v36  ;;  %1998 = vmatprep.subr.bf16.mxu0 %v2124_v2 }
 0x386   : > { %1943 = vmatprep.mubr.msk.f32.mxu0 %vm2125_vm0, %v2126_v4  ;;  %2001 = vmatpush3.bf16.msk.msra.mxu0 %vm2000_vm7, %v1999_v46 }
 0x387   : > { %2002 = vmatprep.subr.bf16.mxu0 %v2124_v2 }
 0x458   : > { %v1170_v41 = vpop.f32.mrb[6].mxu0 }
 0x459   : > { %v1171_v42 = vadd.f32 %v1170_v41, %v1099_v40  ;;  %v1931_v43 = vpop.f32.mrb[7].mxu0 }
 0x45b   : > { %1937 = vmatmul.mubr.msk.f32.vlgmr.msra.gmra.mrb[2].mxu1 %vm770_vm1, %v1171_v42 }
 0x45c   : > { %1948 = vmatprep.mubr.msk.f32.mxu1 %vm2125_vm0, %v2126_v4 }
 0x52e   : > { %v1252_v48 = vpop.f32.mrb[2].mxu1 }
 0x52f   : > { %v1253_v49 = vadd.f32 %v1840_v47, %v1252_v48  ;;  %v1938_v50 = vpop.f32.mrb[3].mxu1 }
 0x531   : > { %1944 = vmatmul.mubr.msk.f32.vlgmr.msra.gmra.mrb[8].mxu0 %vm1265_vm8, %v1253_v49 }
 0x532   : > { %1955 = vmatprep.mubr.msk.f32.mxu0 %vm2125_vm0, %v2126_v4  ;;  %2004 = vmatpush3.bf16.msra.mxu0 %v2003_v60 }
 0x533   : > { %1967 = vmatprep.subr.mxu0 %v2126_v4 }
 0x604   : > { %v1339_v54 = vpop.f32.mrb[8].mxu0 }
 0x605   : > { %v1340_v55 = vadd.f32 %v1842_v53, %v1339_v54  ;;  %v1945_v56 = vpop.f32.mrb[9].mxu0 }
 0x607   : > { %1947 = vmatpush3.msra.mxu1 %v1340_v55 }
 0x608   : > { %1949 = vmatmul.mubr.msk.f32.vlgmr.msra.gmra.mrb[4].mxu1 %vm851_vm2, %v1343_v57  ;;  %2005 = vmatprep.subr.bf16.mxu1 %v2124_v2 }
 0x609   : > { %1964 = vmatprep.mubr.msk.f32.mxu1 %vm2125_vm0, %v2126_v4  ;;  %2007 = vmatpush3.bf16.msra.mxu1 %v2006_v63 }
 0x60a   : > { %1962 = vmatprep.subr.mxu1 %v2126_v4 }
 0x60d   : > { %1963 = vmatpush3.msra.mxu1 %v1507_v6 }
 0x60e   : > { %2008 = vmatprep.subr.bf16.mxu1 %v2124_v2 }
 0x6db   : > { %v1419_v1 = vpop.f32.mrb[4].mxu1 }
 0x6dc   : > { %v1420_v3 = vadd.f32 %v1419_v1, %v1348_v0  ;;  %v1950_v5 = vpop.f32.mrb[5].mxu1 }
 0x6de   : > { %1956 = vmatmul.mubr.msk.f32.vlgmr.msra.gmra.mrb[10].mxu0 %vm770_vm1, %v1420_v3 }
 0x6df   : > { %1969 = vmatprep.mubr.msk.f32.mxu0 %vm2125_vm0, %v2126_v4 }
 0x7b1   : > { %v1501_v8 = vpop.f32.mrb[10].mxu0 }
 0x7b2   : > { %v1502_v9 = vadd.f32 %v1846_v7, %v1501_v8  ;;  %v1957_v10 = vpop.f32.mrb[11].mxu0 }
 0x7b4   : > { %1965 = vmatmul.mubr.msk.f32.vlgmr.msra.gmra.mrb[6].mxu1 %vm1020_vm4, %v1502_v9 }
 0x7b5   : > { %1980 = vmatprep.mubr.msk.f32.mxu1 %vm2125_vm0, %v2126_v4  ;;  %2010 = vmatpush3.bf16.msra.mxu1 %v2009_v13 }
 0x7b6   : > { %2011 = vmatprep.subr.bf16.mxu1 %v2124_v2  ;;  %v1670_v2 = vld [vmem:[%s2549_s23 + $0x10] sm:$0xff] }
 0x7b7   : > { %v2012_v19 = vpack.c.bf16 %v1671_v18, %v1670_v2 }
 0x7b9   : > { %2013 = vmatpush3.bf16.msra.mxu1 %v2012_v19 }
 0x887   : > { %v1584_v15 = vpop.f32.mrb[6].mxu1 }
 0x888   : > { %v1585_v16 = vadd.f32 %v1848_v14, %v1584_v15  ;;  %v1966_v4 = vpop.f32.mrb[7].mxu1 }
 0x88a   : > { %1968 = vmatpush3.msra.mxu0 %v1585_v16 }
 0x88b   : > { %1970 = vmatmul.mubr.msk.f32.vlgmr.msra.gmra.mrb[12].mxu0 %vm851_vm2, %v1588_v17 }
 0x95e   : > { %v1664_v21 = vpop.f32.mrb[12].mxu0 }
 0x95f   : > { %v1665_v22 = vadd.f32 %v1664_v21, %v1593_v20  ;;  %v1971_v23 = vpop.f32.mrb[13].mxu0 }
 0x961   : > { %1981 = vmatmul.mubr.msk.f32.vlgmr.msra.gmra.mrb[8].mxu1 %vm936_vm3, %v1665_v22 }
 0xa34   : > { %v1748_v25 = vpop.f32.mrb[8].mxu1 }
 0xa35   : > { %v1749_v26 = vadd.f32 %v1851_v24, %v1748_v25  ;;  %v1982_v27 = vpop.f32.mrb[9].mxu1 }
 0xa37   : > { %1752 = vst.msk [vmem:[%s755_s26] sm:$0xff] %vm770_vm1, %v1749_v26 }
 0xa38   : > { %2073 = shalt.err (!%p2070_p3)
}
 0xa39   : > { %s2074_s5 = scalar_lea.hbm %s2483_s9, 128  ;;  %s2078_s24 = scalar_lea.hbm %s2597_s28, 256 }
 0xa3a   : > { %p2075_p4 = scmp.ne.s32.totalorder %s2483_s9, %s2074_s5  ;;  %p2079_p9 = scmp.lt.u32.totalorder %s2483_s9, %s2597_s28 }
 0xa3b   : > { %p2080_p10 = scmp.lt.u32.totalorder %s2078_s24, %s2074_s5  ;;  %p2082_p12 = scmp.lt.u32.totalorder %s2074_s5, %s2483_s9 }
 0xa3c   : > { %p2076_p7 = pnand %p2075_p4, %p2298_p5 }
 0xa3d   : > { %p2081_p11 = por %p2080_p10, %p2079_p9 }
 0xa3e   : > { %p2077_p8 = pneg %p2076_p7 }
 0xa3f   : > { %p2083_p13 = por %p2082_p12, %p2081_p11 }
 0xa41   : > { %p2084_p0 = pnand %p2083_p13, %p2077_p8 }
 0xa43   : > { %2087 = shalt.err (!%p2084_p0)
}
 0xa44   : > { %2014 = dma.vmem_to_hbm [thread:$0]  (%p2298_p5), %s2485_s27, 128, %s2483_s9, %s1754_s1  }
 0xa45 PF: > { %s2598_s8 = sld [smem:[#allocation7_spill]]  ;;  %s2599_s7 = sld [smem:[#allocation5_spill]] }
 0xa4b   : > { %p2020_p1 = scmp.ge.s32.totalorder %s2598_s8, 2  ;;  %s1779_s0 = sand.u32 1, %s2599_s7  }
 0xa4c   : > { %s1780_s6 = scalar_lea.sflag [#allocation3], %s1779_s0 }
 0xa4d   : > { %p2017_p2 = pnand %p2020_p1, %p2302_p6 }
 0xa4f   : > { %2105 = dma.done.wait (!%p2017_p2), %s1780_s6, 128  }
 0xa50   : > { %2107 = vsyncadd (!%p2017_p2), %s1780_s6, 4294967168  ;;  %s2601_s30 = sld [smem:[#allocation8_spill]]  ;;  %s2602_s5 = sld [smem:[#allocation6_spill]] }
 0xa51   : > { %s2603_s6 = sld [smem:[#allocation9_spill]]  ;;  %s2604_s29 = smov %s2114_s2 }
 0xa56   : > { %p35_p3 = scmp.ge.s32.totalorder %s2601_s30, 4   ;;  %s2605_s2 = smov %s2602_s5 }
 0xa58   :  { %37 = sbr.rel (!%p35_p3) target bundleno = 16 (0x10), region = 155 }
 0xa5f   :  { %1785 = vsyncpa [#allocation3], 1 }
 0xa60   :  { %1787 = vsyncpa [#allocation3 + $0x1], 1 }

</bundles_post_ra>
